<compile_context>
chip_gen: v7x
topology: tpu7x:2x2x1
jax: 0.10.0
libtpu: 0.0.40
codegen_flags: <defaults>
</compile_context>

<pallas_src>
import jax
import jax.numpy as jnp
from jax.experimental import pallas as pl
from jax.experimental.pallas import tpu as pltpu


def _fixpara_forward_kernel(p_ref, o_ref):
    # 2*sigmoid(p) + 1 == tanh(p/2) + 2 : one EUP tanh, two VPU ops.
    p = p_ref[...]
    o_ref[...] = jnp.tanh(0.5 * p) + 2.0


def fix_gru_model_s_forward(fixpara: jax.Array, x: jax.Array | None = None) -> jax.Array:
    """Mirrors FixGRUModel_S.forward: returns 2*sigmoid(fixpara)+1, shape (outputDim,).

    `x` is accepted (and ignored) to match the PyTorch call signature.
    """
    out_dim = fixpara.shape[0]
    orig_dtype = fixpara.dtype

    # f32 at the kernel boundary; cast back at the end if the parameter was
    # narrower.  (1, out_dim) full-extent block — no padding, no grid.
    p2d = fixpara.astype(jnp.float32).reshape(1, out_dim)

    out2d = pl.pallas_call(
        _fixpara_forward_kernel,
        out_shape=jax.ShapeDtypeStruct((1, out_dim), jnp.float32),
        in_specs=[pl.BlockSpec(memory_space=pltpu.VMEM)],
        out_specs=pl.BlockSpec(memory_space=pltpu.VMEM),
        input_output_aliases={0: 0},
        cost_estimate=pl.CostEstimate(
            flops=2 * out_dim,
            transcendentals=out_dim,
            bytes_accessed=2 * out_dim * 4,
        ),
    )(p2d)

    return out2d.reshape(out_dim).astype(orig_dtype)


if __name__ == "__main__":
    key = jax.random.PRNGKey(0)

    # Module hyper-parameters (small, consistent with the forward/loss usage:
    # loss splits the prediction into 3 * lookAhead pieces -> outputDim = 3).
    inputDim, hiddenNum, outputDim, layerNum = 4, 32, 3, 1
    look_ahead = 1

    # Deterministic parameter init, exactly as in __init__: torch.ones(outputDim)
    fixpara = jnp.ones((outputDim,), dtype=jnp.float32)

    # Example sequence input (batch=2, seq=8, inputDim=4) — ignored by forward,
    # just as in the PyTorch module.
    x = jax.random.normal(key, (2, 8, inputDim), dtype=jnp.float32)

    out = fix_gru_model_s_forward(fixpara, x)
    out = jax.block_until_ready(out)

    # Reference check against plain-JAX semantics of the PyTorch forward.
    ref = 2.0 * jax.nn.sigmoid(fixpara) + 1.0
    assert out.shape == (outputDim,), out.shape
    assert out.dtype == jnp.float32, out.dtype
    assert jnp.allclose(out, ref, atol=1e-6), (out, ref)

    # TODO(synk): the module's `loss` method (gx / divideinverse bisection /
    # fixginverse custom autograd) is not part of forward and is not implemented.

    print("KERNEL_OK")
</pallas_src>

<mosaic_0001>
module attributes {stable_mosaic.version = 11 : i64} {
  func.func @_fixpara_forward_kernel(%arg0: memref<1x3xf32, #tpu.memory_space<vmem>>, %arg1: memref<1x3xf32, #tpu.memory_space<vmem>>) attributes {dimension_semantics = [], scalar_prefetch = 0 : i64, scratch_operands = 0 : i64, tpu.core_type = #tpu.core_type<tc>} {
    %c0 = arith.constant 0 : index
    %c0_0 = arith.constant 0 : index
    %0 = vector.load %arg0[%c0, %c0_0] : memref<1x3xf32, #tpu.memory_space<vmem>>, vector<1x3xf32>
    %cst = arith.constant 5.000000e-01 : f32
    %1 = vector.broadcast %cst : f32 to vector<1x3xf32>
    %2 = arith.mulf %1, %0 : vector<1x3xf32>
    %3 = math.tanh %2 : vector<1x3xf32>
    %cst_1 = arith.constant 2.000000e+00 : f32
    %4 = vector.broadcast %cst_1 : f32 to vector<1x3xf32>
    %5 = arith.addf %3, %4 : vector<1x3xf32>
    %c0_2 = arith.constant 0 : index
    %c0_3 = arith.constant 0 : index
    %6 = vector.load %arg1[%c0_2, %c0_3] : memref<1x3xf32, #tpu.memory_space<vmem>>, vector<1x3xf32>
    tpu.vector_store %arg1[%c0_2, %c0_3], %5 {strides = array<i32>} : memref<1x3xf32, #tpu.memory_space<vmem>>, vector<1x3xf32>,
    return
  }
}

</mosaic_0001>

<bundles_post_ra>
// kernel: tpu_custom_call.1
= control target key start
LH: loop header
LB: loop body
LE: loop exit
PB: predicated region body
PF: predicated region fallthrough
CT: control target
= control target key end

     0   :  { %6 = vsyncpa [#allocation3], 0  ;;  %s130_s0 = inlined_call_operand.hbm [shape: f32[1,3], index: 0, kind: input, shape index: {}, may-alias: {0,1}]   ;;  %s131_s1 = inlined_call_operand.hbm [shape: f32[1,3], index: 1, kind: output, shape index: {}, may-alias: {0,1}]  }
   0x1   :  { %7 = vsyncpa [#allocation4], 0  ;;  %s94_s6 = smov [#allocation2]   ;;  %s46_s10 = scalar_lea.hbm %s130_s0, 16 }
   0x2   :  { %s14_s7 = sshll.u32 %s94_s6, 4  ;;  %p47_p0 = scmp.ne.s32.totalorder %s130_s0, %s46_s10  ;;  %s15_s7 = int_to_ptr.vmem [resolvable:$true] %s14_s7 }
   0x3   :  { %p50_p1 = scmp.lt.u32.totalorder %s46_s10, %s130_s0 }
   0x5   :  { %p52_p2 = pnand %p50_p1, %p47_p0 }
   0x7   :  { %55 = shalt.err (!%p52_p2)
}
   0x8   :  { %s56_s15 = scalar_lea.vmem %s15_s7, 16  ;;  %s60_s16 = scalar_lea.vmem %s15_s7, 32 }
   0x9   :  { %p57_p3 = scmp.ne.s32.totalorder %s15_s7, %s56_s15  ;;  %p61_p4 = scmp.lt.s32.totalorder %s15_s7, %s15_s7 }
   0xa   :  { %p62_p5 = scmp.lt.s32.totalorder %s60_s16, %s56_s15 }
   0xc   :  { %p63_p6 = por %p62_p5, %p61_p4 }
   0xe   :  { %p64_p7 = pnand %p63_p6, %p57_p3 }
  0x10   :  { %67 = shalt.err (!%p64_p7)
}
  0x11   :  { %17 = dma.hbm_to_vmem [thread:$0]  %s130_s0, 16, %s15_s7, [#allocation3]  }
  0x12   :  { %90 = dma.done.wait [#allocation3], 16  }
  0x13   :  { %91 = vsyncadd [#allocation3], 4294967280  ;;  %v21_v0 = vld [vmem:[#allocation2] sm:$0x1]  ;;  %s95_s19 = smov [#allocation5]   ;;  %vm25_vm0 = vcmask 16384  }
  0x14   :  { %v22_v1 = vmul.f32 0.5, %v21_v0  ;;  %s33_s20 = sshll.u32 %s95_s19, 4  ;;  %s34_s20 = int_to_ptr.vmem [resolvable:$true] %s33_s20 }
  0x15   :  { %s68_s21 = scalar_lea.vmem %s34_s20, 16  ;;  %s72_s22 = scalar_lea.vmem %s34_s20, 32 }
  0x16   :  { %44 = vtanh.f32 %v22_v1  ;;  %p69_p8 = scmp.ne.s32.totalorder %s34_s20, %s68_s21  ;;  %p73_p9 = scmp.lt.s32.totalorder %s34_s20, %s34_s20 }
  0x17   :  { %p74_p10 = scmp.lt.s32.totalorder %s72_s22, %s68_s21 }
  0x19   :  { %p75_p11 = por %p74_p10, %p73_p9 }
  0x1b   :  { %p76_p12 = pnand %p75_p11, %p69_p8 }
  0x20   :  { %v45_v2 = vpop.eup %44 }
  0x21   :  { %v24_v3 = vadd.f32 2.0, %v45_v2 }
  0x23   :  { %26 = vst.msk [vmem:[#allocation5] sm:$0x1] %vm25_vm0, %v24_v3 }
  0x24   :  { %79 = shalt.err (!%p76_p12)
}
  0x25   :  { %s80_s24 = scalar_lea.hbm %s131_s1, 16 }
  0x26   :  { %p81_p13 = scmp.ne.s32.totalorder %s131_s1, %s80_s24  ;;  %p84_p0 = scmp.lt.u32.totalorder %s80_s24, %s131_s1 }
  0x28   :  { %p86_p1 = pnand %p84_p0, %p81_p13 }
  0x2a   :  { %89 = shalt.err (!%p86_p1)
}
  0x2b   :  { %36 = dma.vmem_to_hbm [thread:$0]  %s34_s20, 16, %s131_s1, [#allocation4]  }
  0x2c   :  { %92 = dma.done.wait [#allocation4], 16  }
  0x2d   :  { %93 = vsyncadd [#allocation4], 4294967280 }
  0x2e   :  { %40 = vsyncpa [#allocation3], 1 }
  0x2f   :  { %41 = vsyncpa [#allocation4], 1 }

</bundles_post_ra>
